<compile_context>
chip_gen: v6e
topology: v6e:2x2x1
jax: 0.10.0
libtpu: 0.0.40
codegen_flags: <defaults>
</compile_context>

<pallas_src>
import functools
from collections import namedtuple

import jax
import jax.numpy as jnp
from jax.experimental import pallas as pl
from jax.experimental.pallas import tpu as pltpu

model_output = namedtuple("output", ["vertices", "global_orient", "transl"])

_LANES = 512                           # lane width of a coordinate row block
_VMEM_BUDGET_BYTES = 10 * 1024 * 1024  # double-buffered in+out block budget


def _cdiv(a, b):
    return (a + b - 1) // b


def _round_up(x, m):
    return ((x + m - 1) // m) * m


def _pick_batch_tile(batch_size, max_tile=8):
    """Largest divisor of batch_size that is <= max_tile (exact grid, no masking)."""
    for t in range(min(batch_size, max_tile), 0, -1):
        if batch_size % t == 0:
            return t
    return 1


def _pick_sublane_tiles(n_vertices, b_tile, shared, lanes):
    """Choose (s_tile, s_total): sublane tile size and padded sublane extent."""
    s_needed = _cdiv(n_vertices, lanes)
    in_rows = 3 if shared else 3 * b_tile
    out_rows = 3 * b_tile
    # double-buffered f32 bytes per sublane row of the grid step
    bytes_per_row = 2 * 4 * (in_rows + out_rows) * lanes
    s_cap = max(8, (_VMEM_BUDGET_BYTES // bytes_per_row) // 8 * 8)
    if s_needed <= s_cap:
        # one block covering the whole sublane dim (full-dim block: no 8-multiple
        # requirement, no padding beyond the lane round-up)
        return s_needed, s_needed
    n_blocks = _cdiv(s_needed, s_cap)
    s_tile = min(s_cap, _round_up(_cdiv(s_needed, n_blocks), 8))
    return s_tile, _round_up(s_needed, s_tile)


def _prep_template(v_template, lanes, s_total):
    """(..., N, 3) -> sublane/lane-dense (..., 3, s_total, lanes), zero padded."""
    vt = jnp.swapaxes(v_template, -1, -2)                  # (..., 3, N)
    n = vt.shape[-1]
    pad = s_total * lanes - n
    if pad:
        pad_width = [(0, 0)] * (vt.ndim - 1) + [(0, pad)]
        vt = jnp.pad(vt, pad_width)
    return vt.reshape(vt.shape[:-1] + (s_total, lanes))


# ----------------------------------------------------------------------------
# Glue: batch Rodrigues (matches the grabnet / SMPL-X batch_rodrigues exactly)
# ----------------------------------------------------------------------------
def batch_rodrigues(rot_vecs, eps=1e-8):
    # rot_vecs: (B, 3) axis-angle
    angle = jnp.linalg.norm(rot_vecs + eps, axis=1, keepdims=True)       # (B, 1)
    rot_dir = rot_vecs / angle                                           # (B, 3)
    cos = jnp.cos(angle)[:, None, :]                                     # (B, 1, 1)
    sin = jnp.sin(angle)[:, None, :]                                     # (B, 1, 1)
    rx, ry, rz = rot_dir[:, 0], rot_dir[:, 1], rot_dir[:, 2]
    zeros = jnp.zeros_like(rx)
    K = jnp.stack(
        [zeros, -rz, ry, rz, zeros, -rx, -ry, rx, zeros], axis=1
    ).reshape(-1, 3, 3)                                                  # (B, 3, 3)
    ident = jnp.eye(3, dtype=rot_vecs.dtype)[None]
    rot_mat = ident + sin * K + (1.0 - cos) * jnp.matmul(K, K)
    return rot_mat.astype(rot_vecs.dtype)


# ----------------------------------------------------------------------------
# Pallas kernel: for each batch b in the block and coordinate c,
#   out[b, c, :, :] = R[b,0,c]*vx + R[b,1,c]*vy + R[b,2,c]*vz + t[b,c]
# ----------------------------------------------------------------------------
def _object_vertices_kernel(v_ref, rot_ref, transl_ref, out_ref, *, b_tile, shared):
    # v_ref:      (3, s_tile, L)          shared template tile, or
    #             (b_tile, 3, s_tile, L)  per-batch template tile
    # rot_ref:    (B*9,)  SMEM f32, row-major 3x3 rotation matrices
    # transl_ref: (B*3,)  SMEM f32 translations
    # out_ref:    (b_tile, 3, s_tile, L)
    bb = pl.program_id(1)

    if shared:
        vx = v_ref[0, :, :]
        vy = v_ref[1, :, :]
        vz = v_ref[2, :, :]

    for i in range(b_tile):
        if not shared:
            vx = v_ref[i, 0, :, :]
            vy = v_ref[i, 1, :, :]
            vz = v_ref[i, 2, :, :]
        b = bb * b_tile + i
        r = b * 9
        t = b * 3
        for c in range(3):
            out_ref[i, c, :, :] = (
                rot_ref[r + c] * vx
                + rot_ref[r + 3 + c] * vy
                + rot_ref[r + 6 + c] * vz
                + transl_ref[t + c]
            ).astype(out_ref.dtype)


def _object_vertices_call(v_dense, rot_mats, transl, *, n_vertices, b_tile, s_tile,
                          shared, out_dtype, lane_dense_output=False):
    """Run the kernel on an already-prepared dense template."""
    B = rot_mats.shape[0]
    s_total = v_dense.shape[-2]
    lanes = v_dense.shape[-1]
    n_tiles = s_total // s_tile
    b_blocks = B // b_tile

    rot_flat = rot_mats.astype(jnp.float32).reshape(B * 9)      # 1-D SMEM operand
    transl_flat = transl.astype(jnp.float32).reshape(B * 3)     # 1-D SMEM operand

    if shared:
        v_spec = pl.BlockSpec((3, s_tile, lanes), lambda n, b: (0, n, 0))
    else:
        v_spec = pl.BlockSpec((b_tile, 3, s_tile, lanes), lambda n, b: (b, 0, n, 0))

    kernel = functools.partial(_object_vertices_kernel, b_tile=b_tile, shared=shared)

    out = pl.pallas_call(
        kernel,
        out_shape=jax.ShapeDtypeStruct((B, 3, s_total, lanes), out_dtype),
        grid_spec=pltpu.PrefetchScalarGridSpec(
            num_scalar_prefetch=0,
            # n outermost (large axis -> core sharding on multi-TC chips),
            # b innermost (shared template block index constant -> no re-DMA).
            grid=(n_tiles, b_blocks),
            in_specs=[
                v_spec,
                pl.BlockSpec(memory_space=pltpu.MemorySpace.SMEM),  # rot (B*9,)
                pl.BlockSpec(memory_space=pltpu.MemorySpace.SMEM),  # transl (B*3,)
            ],
            out_specs=pl.BlockSpec(
                (b_tile, 3, s_tile, lanes), lambda n, b: (b, 0, n, 0)
            ),
        ),
        compiler_params=pltpu.CompilerParams(
            dimension_semantics=("parallel", "parallel")
        ),
    )(v_dense, rot_flat, transl_flat)

    out = out.reshape(B, 3, s_total * lanes)[:, :, :n_vertices]   # (B, 3, N)
    if lane_dense_output:
        return out                      # lane-dense layout, no final transpose
    return jnp.swapaxes(out, 1, 2)      # (B, N, 3) — PyTorch convention


def object_vertices_pallas(v_template, rot_mats, transl, *, lanes=_LANES,
                           lane_dense_output=False):
    """vertices = v_template @ rot_mats + transl[:, None].

    v_template: (N, 3) shared template or (B, N, 3) per-batch template
    rot_mats:   (B, 3, 3); transl: (B, 3)
    """
    B = rot_mats.shape[0]
    shared = v_template.ndim == 2
    N = v_template.shape[-2]
    b_tile = _pick_batch_tile(B)
    s_tile, s_total = _pick_sublane_tiles(N, b_tile, shared, lanes)
    v_dense = _prep_template(v_template, lanes, s_total)
    return _object_vertices_call(
        v_dense, rot_mats, transl, n_vertices=N, b_tile=b_tile, s_tile=s_tile,
        shared=shared, out_dtype=v_template.dtype,
        lane_dense_output=lane_dense_output)


# ----------------------------------------------------------------------------
# ObjectModel equivalent
# ----------------------------------------------------------------------------
class ObjectModelPallas:
    def __init__(self, v_template, batch_size=1, dtype=jnp.float32, lanes=_LANES):
        # The template is stored ONCE (broadcast across the batch in the kernel),
        # semantically identical to the PyTorch np.repeat(v_template, batch_size).
        self.dtype = dtype
        self.batch_size = batch_size
        self.v_template = jnp.asarray(v_template, dtype=dtype)          # (N, 3)
        self.num_vertices = self.v_template.shape[0]
        # Parameters initialized to zeros (matches __init__).
        self.transl = jnp.zeros((batch_size, 3), dtype=dtype)
        self.global_orient = jnp.zeros((batch_size, 3), dtype=dtype)
        # Cache the sublane/lane-dense, padded template once (no per-call
        # transpose+pad round trip through HBM).
        self._lanes = lanes
        self._b_tile = _pick_batch_tile(batch_size)
        self._s_tile, self._s_total = _pick_sublane_tiles(
            self.num_vertices, self._b_tile, True, lanes)
        self._v_dense = _prep_template(self.v_template, lanes, self._s_total)

    def __call__(self, global_orient=None, transl=None, v_template=None,
                 lane_dense_output=False, **kwargs):
        if global_orient is None:
            global_orient = self.global_orient
        if transl is None:
            transl = self.transl
        rot_mats = batch_rodrigues(global_orient.reshape(-1, 3)).reshape(
            self.batch_size, 3, 3)
        if v_template is None:
            vertices = _object_vertices_call(
                self._v_dense, rot_mats, transl,
                n_vertices=self.num_vertices, b_tile=self._b_tile,
                s_tile=self._s_tile, shared=True, out_dtype=self.dtype,
                lane_dense_output=lane_dense_output)
        else:
            vertices = object_vertices_pallas(
                jnp.asarray(v_template, dtype=self.dtype), rot_mats, transl,
                lanes=self._lanes, lane_dense_output=lane_dense_output)
        return model_output(
            vertices=vertices, global_orient=global_orient, transl=transl)


if __name__ == "__main__":
    key = jax.random.PRNGKey(0)
    k1, k2, k3 = jax.random.split(key, 3)

    B = 2          # batch_size
    N = 200        # number of object vertices (not a multiple of 128 -> padding path)

    v_template = jax.random.normal(k1, (N, 3), dtype=jnp.float32)
    global_orient = 0.5 * jax.random.normal(k2, (B, 3), dtype=jnp.float32)
    transl = 0.1 * jax.random.normal(k3, (B, 3), dtype=jnp.float32)

    model = ObjectModelPallas(v_template, batch_size=B)
    out = model(global_orient=global_orient, transl=transl)
    jax.block_until_ready(out.vertices)

    # Reference check (plain JAX).
    rot_ref = batch_rodrigues(global_orient)
    v_batched = jnp.repeat(v_template[None], B, axis=0)                 # (B, N, 3)
    verts_ref = jnp.matmul(v_batched, rot_ref) + transl[:, None, :]
    assert out.vertices.shape == (B, N, 3)
    assert jnp.allclose(out.vertices, verts_ref, atol=1e-5, rtol=1e-5)

    # Lane-dense output path (skips the final (B,3,N)->(B,N,3) transpose).
    out_ld = model(global_orient=global_orient, transl=transl, lane_dense_output=True)
    jax.block_until_ready(out_ld.vertices)
    assert out_ld.vertices.shape == (B, 3, N)
    assert jnp.allclose(jnp.swapaxes(out_ld.vertices, 1, 2), verts_ref,
                        atol=1e-5, rtol=1e-5)

    # Per-batch template override path.
    out2 = model(global_orient=global_orient, transl=transl, v_template=v_batched)
    jax.block_until_ready(out2.vertices)
    assert jnp.allclose(out2.vertices, verts_ref, atol=1e-5, rtol=1e-5)

    print("KERNEL_OK")
</pallas_src>

<mosaic_0001>
module attributes {stable_mosaic.version = 11 : i64} {
  func.func @_object_vertices_kernel(%arg0: i32, %arg1: i32, %arg2: memref<3x1x512xf32, #tpu.memory_space<vmem>>, %arg3: memref<18xf32, #tpu.memory_space<smem>>, %arg4: memref<6xf32, #tpu.memory_space<smem>>, %arg5: memref<2x3x1x512xf32, #tpu.memory_space<vmem>>) attributes {dimension_semantics = [#tpu.dimension_semantics<parallel>, #tpu.dimension_semantics<parallel>], iteration_bounds = array<i64: 1, 1>, scalar_prefetch = 0 : i64, scratch_operands = 0 : i64, tpu.core_type = #tpu.core_type<tc>, window_params = [{transform_indices = @transform_0, window_bounds = array<i64: 3, 1, 512>}, {transform_indices = @transform_1, window_bounds = array<i64: 18>}, {transform_indices = @transform_2, window_bounds = array<i64: 6>}, {transform_indices = @transform_3, window_bounds = array<i64: 2, 3, 1, 512>}]} {
    %c0 = arith.constant 0 : index
    %c0_0 = arith.constant 0 : index
    %c0_1 = arith.constant 0 : index
    %0 = vector.load %arg2[%c0, %c0_0, %c0_1] : memref<3x1x512xf32, #tpu.memory_space<vmem>>, vector<1x1x512xf32>
    %1 = vector.shape_cast %0 : vector<1x1x512xf32> to vector<1x512xf32>
    %c1 = arith.constant 1 : index
    %c0_2 = arith.constant 0 : index
    %c0_3 = arith.constant 0 : index
    %2 = vector.load %arg2[%c1, %c0_2, %c0_3] : memref<3x1x512xf32, #tpu.memory_space<vmem>>, vector<1x1x512xf32>
    %3 = vector.shape_cast %2 : vector<1x1x512xf32> to vector<1x512xf32>
    %c2 = arith.constant 2 : index
    %c0_4 = arith.constant 0 : index
    %c0_5 = arith.constant 0 : index
    %4 = vector.load %arg2[%c2, %c0_4, %c0_5] : memref<3x1x512xf32, #tpu.memory_space<vmem>>, vector<1x1x512xf32>
    %5 = vector.shape_cast %4 : vector<1x1x512xf32> to vector<1x512xf32>
    %c2_i32 = arith.constant 2 : i32
    %6 = arith.muli %arg1, %c2_i32 : i32
    %c0_i32 = arith.constant 0 : i32
    %7 = arith.addi %6, %c0_i32 : i32
    %c9_i32 = arith.constant 9 : i32
    %8 = arith.muli %7, %c9_i32 : i32
    %c3_i32 = arith.constant 3 : i32
    %9 = arith.muli %7, %c3_i32 : i32
    %c0_i32_6 = arith.constant 0 : i32
    %10 = arith.addi %8, %c0_i32_6 : i32
    %11 = arith.index_cast %10 : i32 to index
    %12 = memref.load %arg3[%11] : memref<18xf32, #tpu.memory_space<smem>>
    %13 = vector.broadcast %12 : f32 to vector<1x512xf32>
    %14 = arith.mulf %13, %1 : vector<1x512xf32>
    %c3_i32_7 = arith.constant 3 : i32
    %15 = arith.addi %8, %c3_i32_7 : i32
    %c0_i32_8 = arith.constant 0 : i32
    %16 = arith.addi %15, %c0_i32_8 : i32
    %17 = arith.index_cast %16 : i32 to index
    %18 = memref.load %arg3[%17] : memref<18xf32, #tpu.memory_space<smem>>
    %19 = vector.broadcast %18 : f32 to vector<1x512xf32>
    %20 = arith.mulf %19, %3 : vector<1x512xf32>
    %21 = arith.addf %14, %20 : vector<1x512xf32>
    %c6_i32 = arith.constant 6 : i32
    %22 = arith.addi %8, %c6_i32 : i32
    %c0_i32_9 = arith.constant 0 : i32
    %23 = arith.addi %22, %c0_i32_9 : i32
    %24 = arith.index_cast %23 : i32 to index
    %25 = memref.load %arg3[%24] : memref<18xf32, #tpu.memory_space<smem>>
    %26 = vector.broadcast %25 : f32 to vector<1x512xf32>
    %27 = arith.mulf %26, %5 : vector<1x512xf32>
    %28 = arith.addf %21, %27 : vector<1x512xf32>
    %c0_i32_10 = arith.constant 0 : i32
    %29 = arith.addi %9, %c0_i32_10 : i32
    %30 = arith.index_cast %29 : i32 to index
    %31 = memref.load %arg4[%30] : memref<6xf32, #tpu.memory_space<smem>>
    %32 = vector.broadcast %31 : f32 to vector<1x512xf32>
    %33 = arith.addf %28, %32 : vector<1x512xf32>
    %c0_11 = arith.constant 0 : index
    %c0_12 = arith.constant 0 : index
    %c0_13 = arith.constant 0 : index
    %c0_14 = arith.constant 0 : index
    %34 = vector.load %arg5[%c0_11, %c0_12, %c0_13, %c0_14] : memref<2x3x1x512xf32, #tpu.memory_space<vmem>>, vector<1x1x1x512xf32>
    %35 = vector.shape_cast %34 : vector<1x1x1x512xf32> to vector<1x512xf32>
    %36 = vector.shape_cast %33 : vector<1x512xf32> to vector<1x1x1x512xf32>
    tpu.vector_store %arg5[%c0_11, %c0_12, %c0_13, %c0_14], %36 {strides = array<i32>} : memref<2x3x1x512xf32, #tpu.memory_space<vmem>>, vector<1x1x1x512xf32>,
    %c1_i32 = arith.constant 1 : i32
    %37 = arith.addi %8, %c1_i32 : i32
    %38 = arith.index_cast %37 : i32 to index
    %39 = memref.load %arg3[%38] : memref<18xf32, #tpu.memory_space<smem>>
    %40 = vector.broadcast %39 : f32 to vector<1x512xf32>
    %41 = arith.mulf %40, %1 : vector<1x512xf32>
    %c3_i32_15 = arith.constant 3 : i32
    %42 = arith.addi %8, %c3_i32_15 : i32
    %c1_i32_16 = arith.constant 1 : i32
    %43 = arith.addi %42, %c1_i32_16 : i32
    %44 = arith.index_cast %43 : i32 to index
    %45 = memref.load %arg3[%44] : memref<18xf32, #tpu.memory_space<smem>>
    %46 = vector.broadcast %45 : f32 to vector<1x512xf32>
    %47 = arith.mulf %46, %3 : vector<1x512xf32>
    %48 = arith.addf %41, %47 : vector<1x512xf32>
    %c6_i32_17 = arith.constant 6 : i32
    %49 = arith.addi %8, %c6_i32_17 : i32
    %c1_i32_18 = arith.constant 1 : i32
    %50 = arith.addi %49, %c1_i32_18 : i32
    %51 = arith.index_cast %50 : i32 to index
    %52 = memref.load %arg3[%51] : memref<18xf32, #tpu.memory_space<smem>>
    %53 = vector.broadcast %52 : f32 to vector<1x512xf32>
    %54 = arith.mulf %53, %5 : vector<1x512xf32>
    %55 = arith.addf %48, %54 : vector<1x512xf32>
    %c1_i32_19 = arith.constant 1 : i32
    %56 = arith.addi %9, %c1_i32_19 : i32
    %57 = arith.index_cast %56 : i32 to index
    %58 = memref.load %arg4[%57] : memref<6xf32, #tpu.memory_space<smem>>
    %59 = vector.broadcast %58 : f32 to vector<1x512xf32>
    %60 = arith.addf %55, %59 : vector<1x512xf32>
    %c0_20 = arith.constant 0 : index
    %c1_21 = arith.constant 1 : index
    %c0_22 = arith.constant 0 : index
    %c0_23 = arith.constant 0 : index
    %61 = vector.load %arg5[%c0_20, %c1_21, %c0_22, %c0_23] : memref<2x3x1x512xf32, #tpu.memory_space<vmem>>, vector<1x1x1x512xf32>
    %62 = vector.shape_cast %61 : vector<1x1x1x512xf32> to vector<1x512xf32>
    %63 = vector.shape_cast %60 : vector<1x512xf32> to vector<1x1x1x512xf32>
    tpu.vector_store %arg5[%c0_20, %c1_21, %c0_22, %c0_23], %63 {strides = array<i32>} : memref<2x3x1x512xf32, #tpu.memory_space<vmem>>, vector<1x1x1x512xf32>,
    %c2_i32_24 = arith.constant 2 : i32
    %64 = arith.addi %8, %c2_i32_24 : i32
    %65 = arith.index_cast %64 : i32 to index
    %66 = memref.load %arg3[%65] : memref<18xf32, #tpu.memory_space<smem>>
    %67 = vector.broadcast %66 : f32 to vector<1x512xf32>
    %68 = arith.mulf %67, %1 : vector<1x512xf32>
    %c3_i32_25 = arith.constant 3 : i32
    %69 = arith.addi %8, %c3_i32_25 : i32
    %c2_i32_26 = arith.constant 2 : i32
    %70 = arith.addi %69, %c2_i32_26 : i32
    %71 = arith.index_cast %70 : i32 to index
    %72 = memref.load %arg3[%71] : memref<18xf32, #tpu.memory_space<smem>>
    %73 = vector.broadcast %72 : f32 to vector<1x512xf32>
    %74 = arith.mulf %73, %3 : vector<1x512xf32>
    %75 = arith.addf %68, %74 : vector<1x512xf32>
    %c6_i32_27 = arith.constant 6 : i32
    %76 = arith.addi %8, %c6_i32_27 : i32
    %c2_i32_28 = arith.constant 2 : i32
    %77 = arith.addi %76, %c2_i32_28 : i32
    %78 = arith.index_cast %77 : i32 to index
    %79 = memref.load %arg3[%78] : memref<18xf32, #tpu.memory_space<smem>>
    %80 = vector.broadcast %79 : f32 to vector<1x512xf32>
    %81 = arith.mulf %80, %5 : vector<1x512xf32>
    %82 = arith.addf %75, %81 : vector<1x512xf32>
    %c2_i32_29 = arith.constant 2 : i32
    %83 = arith.addi %9, %c2_i32_29 : i32
    %84 = arith.index_cast %83 : i32 to index
    %85 = memref.load %arg4[%84] : memref<6xf32, #tpu.memory_space<smem>>
    %86 = vector.broadcast %85 : f32 to vector<1x512xf32>
    %87 = arith.addf %82, %86 : vector<1x512xf32>
    %c0_30 = arith.constant 0 : index
    %c2_31 = arith.constant 2 : index
    %c0_32 = arith.constant 0 : index
    %c0_33 = arith.constant 0 : index
    %88 = vector.load %arg5[%c0_30, %c2_31, %c0_32, %c0_33] : memref<2x3x1x512xf32, #tpu.memory_space<vmem>>, vector<1x1x1x512xf32>
    %89 = vector.shape_cast %88 : vector<1x1x1x512xf32> to vector<1x512xf32>
    %90 = vector.shape_cast %87 : vector<1x512xf32> to vector<1x1x1x512xf32>
    tpu.vector_store %arg5[%c0_30, %c2_31, %c0_32, %c0_33], %90 {strides = array<i32>} : memref<2x3x1x512xf32, #tpu.memory_space<vmem>>, vector<1x1x1x512xf32>,
    %c2_i32_34 = arith.constant 2 : i32
    %91 = arith.muli %arg1, %c2_i32_34 : i32
    %c1_i32_35 = arith.constant 1 : i32
    %92 = arith.addi %91, %c1_i32_35 : i32
    %c9_i32_36 = arith.constant 9 : i32
    %93 = arith.muli %92, %c9_i32_36 : i32
    %c3_i32_37 = arith.constant 3 : i32
    %94 = arith.muli %92, %c3_i32_37 : i32
    %c0_i32_38 = arith.constant 0 : i32
    %95 = arith.addi %93, %c0_i32_38 : i32
    %96 = arith.index_cast %95 : i32 to index
    %97 = memref.load %arg3[%96] : memref<18xf32, #tpu.memory_space<smem>>
    %98 = vector.broadcast %97 : f32 to vector<1x512xf32>
    %99 = arith.mulf %98, %1 : vector<1x512xf32>
    %c3_i32_39 = arith.constant 3 : i32
    %100 = arith.addi %93, %c3_i32_39 : i32
    %c0_i32_40 = arith.constant 0 : i32
    %101 = arith.addi %100, %c0_i32_40 : i32
    %102 = arith.index_cast %101 : i32 to index
    %103 = memref.load %arg3[%102] : memref<18xf32, #tpu.memory_space<smem>>
    %104 = vector.broadcast %103 : f32 to vector<1x512xf32>
    %105 = arith.mulf %104, %3 : vector<1x512xf32>
    %106 = arith.addf %99, %105 : vector<1x512xf32>
    %c6_i32_41 = arith.constant 6 : i32
    %107 = arith.addi %93, %c6_i32_41 : i32
    %c0_i32_42 = arith.constant 0 : i32
    %108 = arith.addi %107, %c0_i32_42 : i32
    %109 = arith.index_cast %108 : i32 to index
    %110 = memref.load %arg3[%109] : memref<18xf32, #tpu.memory_space<smem>>
    %111 = vector.broadcast %110 : f32 to vector<1x512xf32>
    %112 = arith.mulf %111, %5 : vector<1x512xf32>
    %113 = arith.addf %106, %112 : vector<1x512xf32>
    %c0_i32_43 = arith.constant 0 : i32
    %114 = arith.addi %94, %c0_i32_43 : i32
    %115 = arith.index_cast %114 : i32 to index
    %116 = memref.load %arg4[%115] : memref<6xf32, #tpu.memory_space<smem>>
    %117 = vector.broadcast %116 : f32 to vector<1x512xf32>
    %118 = arith.addf %113, %117 : vector<1x512xf32>
    %c1_44 = arith.constant 1 : index
    %c0_45 = arith.constant 0 : index
    %c0_46 = arith.constant 0 : index
    %c0_47 = arith.constant 0 : index
    %119 = vector.load %arg5[%c1_44, %c0_45, %c0_46, %c0_47] : memref<2x3x1x512xf32, #tpu.memory_space<vmem>>, vector<1x1x1x512xf32>
    %120 = vector.shape_cast %119 : vector<1x1x1x512xf32> to vector<1x512xf32>
    %121 = vector.shape_cast %118 : vector<1x512xf32> to vector<1x1x1x512xf32>
    tpu.vector_store %arg5[%c1_44, %c0_45, %c0_46, %c0_47], %121 {strides = array<i32>} : memref<2x3x1x512xf32, #tpu.memory_space<vmem>>, vector<1x1x1x512xf32>,
    %c1_i32_48 = arith.constant 1 : i32
    %122 = arith.addi %93, %c1_i32_48 : i32
    %123 = arith.index_cast %122 : i32 to index
    %124 = memref.load %arg3[%123] : memref<18xf32, #tpu.memory_space<smem>>
    %125 = vector.broadcast %124 : f32 to vector<1x512xf32>
    %126 = arith.mulf %125, %1 : vector<1x512xf32>
    %c3_i32_49 = arith.constant 3 : i32
    %127 = arith.addi %93, %c3_i32_49 : i32
    %c1_i32_50 = arith.constant 1 : i32
    %128 = arith.addi %127, %c1_i32_50 : i32
    %129 = arith.index_cast %128 : i32 to index
    %130 = memref.load %arg3[%129] : memref<18xf32, #tpu.memory_space<smem>>
    %131 = vector.broadcast %130 : f32 to vector<1x512xf32>
    %132 = arith.mulf %131, %3 : vector<1x512xf32>
    %133 = arith.addf %126, %132 : vector<1x512xf32>
    %c6_i32_51 = arith.constant 6 : i32
    %134 = arith.addi %93, %c6_i32_51 : i32
    %c1_i32_52 = arith.constant 1 : i32
    %135 = arith.addi %134, %c1_i32_52 : i32
    %136 = arith.index_cast %135 : i32 to index
    %137 = memref.load %arg3[%136] : memref<18xf32, #tpu.memory_space<smem>>
    %138 = vector.broadcast %137 : f32 to vector<1x512xf32>
    %139 = arith.mulf %138, %5 : vector<1x512xf32>
    %140 = arith.addf %133, %139 : vector<1x512xf32>
    %c1_i32_53 = arith.constant 1 : i32
    %141 = arith.addi %94, %c1_i32_53 : i32
    %142 = arith.index_cast %141 : i32 to index
    %143 = memref.load %arg4[%142] : memref<6xf32, #tpu.memory_space<smem>>
    %144 = vector.broadcast %143 : f32 to vector<1x512xf32>
    %145 = arith.addf %140, %144 : vector<1x512xf32>
    %c1_54 = arith.constant 1 : index
    %c1_55 = arith.constant 1 : index
    %c0_56 = arith.constant 0 : index
    %c0_57 = arith.constant 0 : index
    %146 = vector.load %arg5[%c1_54, %c1_55, %c0_56, %c0_57] : memref<2x3x1x512xf32, #tpu.memory_space<vmem>>, vector<1x1x1x512xf32>
    %147 = vector.shape_cast %146 : vector<1x1x1x512xf32> to vector<1x512xf32>
    %148 = vector.shape_cast %145 : vector<1x512xf32> to vector<1x1x1x512xf32>
    tpu.vector_store %arg5[%c1_54, %c1_55, %c0_56, %c0_57], %148 {strides = array<i32>} : memref<2x3x1x512xf32, #tpu.memory_space<vmem>>, vector<1x1x1x512xf32>,
    %c2_i32_58 = arith.constant 2 : i32
    %149 = arith.addi %93, %c2_i32_58 : i32
    %150 = arith.index_cast %149 : i32 to index
    %151 = memref.load %arg3[%150] : memref<18xf32, #tpu.memory_space<smem>>
    %152 = vector.broadcast %151 : f32 to vector<1x512xf32>
    %153 = arith.mulf %152, %1 : vector<1x512xf32>
    %c3_i32_59 = arith.constant 3 : i32
    %154 = arith.addi %93, %c3_i32_59 : i32
    %c2_i32_60 = arith.constant 2 : i32
    %155 = arith.addi %154, %c2_i32_60 : i32
    %156 = arith.index_cast %155 : i32 to index
    %157 = memref.load %arg3[%156] : memref<18xf32, #tpu.memory_space<smem>>
    %158 = vector.broadcast %157 : f32 to vector<1x512xf32>
    %159 = arith.mulf %158, %3 : vector<1x512xf32>
    %160 = arith.addf %153, %159 : vector<1x512xf32>
    %c6_i32_61 = arith.constant 6 : i32
    %161 = arith.addi %93, %c6_i32_61 : i32
    %c2_i32_62 = arith.constant 2 : i32
    %162 = arith.addi %161, %c2_i32_62 : i32
    %163 = arith.index_cast %162 : i32 to index
    %164 = memref.load %arg3[%163] : memref<18xf32, #tpu.memory_space<smem>>
    %165 = vector.broadcast %164 : f32 to vector<1x512xf32>
    %166 = arith.mulf %165, %5 : vector<1x512xf32>
    %167 = arith.addf %160, %166 : vector<1x512xf32>
    %c2_i32_63 = arith.constant 2 : i32
    %168 = arith.addi %94, %c2_i32_63 : i32
    %169 = arith.index_cast %168 : i32 to index
    %170 = memref.load %arg4[%169] : memref<6xf32, #tpu.memory_space<smem>>
    %171 = vector.broadcast %170 : f32 to vector<1x512xf32>
    %172 = arith.addf %167, %171 : vector<1x512xf32>
    %c1_64 = arith.constant 1 : index
    %c2_65 = arith.constant 2 : index
    %c0_66 = arith.constant 0 : index
    %c0_67 = arith.constant 0 : index
    %173 = vector.load %arg5[%c1_64, %c2_65, %c0_66, %c0_67] : memref<2x3x1x512xf32, #tpu.memory_space<vmem>>, vector<1x1x1x512xf32>
    %174 = vector.shape_cast %173 : vector<1x1x1x512xf32> to vector<1x512xf32>
    %175 = vector.shape_cast %172 : vector<1x512xf32> to vector<1x1x1x512xf32>
    tpu.vector_store %arg5[%c1_64, %c2_65, %c0_66, %c0_67], %175 {strides = array<i32>} : memref<2x3x1x512xf32, #tpu.memory_space<vmem>>, vector<1x1x1x512xf32>,
    return
  }
  func.func @transform_0(%arg0: i32, %arg1: i32) -> (i32, i32, i32) {
    %c0_i32 = arith.constant 0 : i32
    %c0_i32_0 = arith.constant 0 : i32
    %c0_i32_1 = arith.constant 0 : i32
    return %c0_i32, %arg0, %c0_i32_0 : i32, i32, i32
  }
  func.func @transform_1(%arg0: i32, %arg1: i32) -> i32 {
    %c0_i32 = arith.constant 0 : i32
    %c0_i32_0 = arith.constant 0 : i32
    return %c0_i32 : i32
  }
  func.func @transform_2(%arg0: i32, %arg1: i32) -> i32 {
    %c0_i32 = arith.constant 0 : i32
    %c0_i32_0 = arith.constant 0 : i32
    return %c0_i32 : i32
  }
  func.func @transform_3(%arg0: i32, %arg1: i32) -> (i32, i32, i32, i32) {
    %c0_i32 = arith.constant 0 : i32
    %c0_i32_0 = arith.constant 0 : i32
    %c0_i32_1 = arith.constant 0 : i32
    return %arg1, %c0_i32, %arg0, %c0_i32_0 : i32, i32, i32, i32
  }
}

</mosaic_0001>

<bundles_post_ra>
// kernel: tpu_custom_call.1
= control target key start
LH: loop header
LB: loop body
LE: loop exit
PB: predicated region body
PF: predicated region fallthrough
CT: control target
= control target key end

     0   :  { %8 = vsyncpa [#allocation3], 0  ;;  %s402_s0 = inlined_call_operand.hbm [shape: f32[3,1,512], index: 0, kind: input, shape index: {}]   ;;  %s403_s1 = inlined_call_operand.vmem [shape: f32[18], index: 1, kind: input, shape index: {}]   ;;  %s404_s2 = inlined_call_operand.vmem [shape: f32[6], index: 2, kind: input, shape index: {}]   ;;  %s405_s3 = inlined_call_operand.hbm [shape: f32[2,3,1,512], index: 3, kind: output, shape index: {}]  }
   0x1   :  { %9 = vsyncpa [#allocation5], 0 }
   0x2   :  { %10 = vsyncpa [#allocation8], 0 }
   0x3   :  { %11 = vsyncpa [#allocation4], 0  ;;  %s303_s12 = smov [#allocation2]   ;;  %s30_s16 = sshll.u32 %s403_s1, 4  ;;  %s31_s16 = int_to_ptr.vmem [resolvable:$true] %s30_s16 }
   0x4   :  { %s17_s13 = sshll.u32 %s303_s12, 4  ;;  %s18_s13 = int_to_ptr.vmem [resolvable:$true] %s17_s13 }
   0x5   :  { %s239_s17 = scalar_lea.vmem %s18_s13, 192  ;;  %p244_p1 = scmp.lt.s32.totalorder %s18_s13, %s18_s13 }
   0x6   :  { %p240_p0 = scmp.ne.s32.totalorder %s18_s13, %s239_s17  ;;  %p245_p2 = scmp.lt.s32.totalorder %s239_s17, %s239_s17 }
   0x8   :  { %p246_p3 = por %p245_p2, %p244_p1 }
   0xa   :  { %p247_p4 = pnand %p246_p3, %p240_p0 }
   0xc   :  { %250 = shalt.err (!%p247_p4)
}
   0xd   :  { %s304_s18 = smov 64   ;;  %s305_s19 = smov 4  }
   0xe   :  { %23 = dma.hbm_to_vmem [thread:$0]  %s402_s0, 192, %s18_s13, [#allocation3], %s304_s18, %s304_s18, %s305_s19  }
   0xf   :  { %s251_s22 = scalar_lea.vmem %s31_s16, 16  ;;  %p256_p6 = scmp.lt.s32.totalorder %s31_s16, %s31_s16 }
  0x10   :  { %p252_p5 = scmp.ne.s32.totalorder %s31_s16, %s251_s22  ;;  %p257_p7 = scmp.lt.s32.totalorder %s251_s22, %s251_s22 }
  0x12   :  { %p258_p8 = por %p257_p7, %p256_p6 }
  0x14   :  { %p259_p9 = pnand %p258_p8, %p252_p5 }
  0x16   :  { %262 = shalt.err (!%p259_p9)
}
  0x17   :  { %s306_s1 = smov [#allocation6]   ;;  %s40_s25 = sshll.u32 %s404_s2, 4  ;;  %s41_s25 = int_to_ptr.vmem [resolvable:$true] %s40_s25 }
  0x18   :  { %33 = dma.vmem_to_smem %s31_s16, 16, %s306_s1, [#allocation5]  }
  0x19   :  { %s263_s26 = scalar_lea.vmem %s41_s25, 16  ;;  %p268_p11 = scmp.lt.s32.totalorder %s41_s25, %s41_s25 }
  0x1a   :  { %p264_p10 = scmp.ne.s32.totalorder %s41_s25, %s263_s26  ;;  %p269_p12 = scmp.lt.s32.totalorder %s263_s26, %s263_s26 }
  0x1c   :  { %p270_p13 = por %p269_p12, %p268_p11 }
  0x1e   :  { %p271_p0 = pnand %p270_p13, %p264_p10 }
  0x20   :  { %274 = shalt.err (!%p271_p0)
}
  0x21   :  { %s307_s0 = smov [#allocation7]  }
  0x22   :  { %43 = dma.vmem_to_smem %s41_s25, 16, %s307_s0, [#allocation8]  }
  0x23   :  { %295 = dma.done.wait [#allocation3], 192  }
  0x24   :  { %296 = vsyncadd [#allocation3], 4294967104 }
  0x25   :  { %297 = dma.done.wait [#allocation5], 16  }
  0x26   :  { %298 = vsyncadd [#allocation5], 4294967280 }
  0x27   :  { %299 = dma.done.wait [#allocation8], 16  }
  0x28   :  { %300 = vsyncadd [#allocation8], 4294967280 }
  0x29   :  { %53 = sfence }
  0x2a   :  { %s61_s27 = sld [smem:[#allocation6]]  ;;  %v343_v0 = vld [vmem:[#allocation2] sm:$0xf]  ;;  %v345_v1 = vld [vmem:[#allocation2 + $0x4] sm:$0xf]  ;;  %v77_v9 = vlaneseq  ;;  %s308_s24 = smov [#allocation9]  }
  0x2b   :  { %s203_s28 = sld [smem:[#allocation6 + $0x3]]  ;;  %v347_v2 = vld [vmem:[#allocation2 + $0x8] sm:$0xf]  ;;  %s189_s25 = sshll.u32 %s308_s24, 4  ;;  %s190_s25 = int_to_ptr.vmem [resolvable:$true] %s189_s25 }
  0x2c   :  { %s204_s2 = sld [smem:[#allocation6 + $0x6]]  ;;  %vm359_vm0 = vcmp.lt.s32.totalorder %v77_v9, 512  ;;  %s275_s26 = scalar_lea.vmem %s190_s25, 384 }
  0x2d   :  { %s341_s29 = sld [smem:[#allocation7]]  ;;  %p276_p1 = scmp.ne.s32.totalorder %s190_s25, %s275_s26 }
  0x2e   :  { %s205_s30 = sld [smem:[#allocation6 + $0x1]]  ;;  %p280_p2 = scmp.lt.s32.totalorder %s190_s25, %s190_s25 }
  0x2f   :  { %s206_s4 = sld [smem:[#allocation6 + $0x4]]  ;;  %p281_p3 = scmp.lt.s32.totalorder %s275_s26, %s275_s26 }
  0x30   :  { %v62_v3 = vstv %s61_s27  ;;  %s207_s5 = sld [smem:[#allocation6 + $0x7]] }
  0x31   :  { %v63_v4 = vmul.f32 %v62_v3, %v343_v0  ;;  %v66_v5 = vstv %s203_s28  ;;  %s350_s6 = sld [smem:[#allocation7 + $0x1]]  ;;  %p282_p4 = por %p281_p3, %p280_p2 }
  0x32   :  { %v67_v6 = vmul.f32 %v66_v5, %v345_v1  ;;  %v71_v7 = vstv %s204_s2  ;;  %s209_s7 = sld [smem:[#allocation6 + $0x2]] }
  0x33   :  { %v72_v8 = vmul.f32 %v71_v7, %v347_v2  ;;  %s210_s8 = sld [smem:[#allocation6 + $0x5]]  ;;  %v75_v12 = vstv %s341_s29  ;;  %p283_p5 = pnand %p282_p4, %p276_p1 }
  0x34   :  { %v68_v10 = vadd.f32 %v67_v6, %v63_v4  ;;  %v84_v11 = vstv %s205_s30  ;;  %s211_s9 = sld [smem:[#allocation6 + $0x8]] }
  0x35   :  { %v85_v13 = vmul.f32 %v84_v11, %v343_v0  ;;  %v88_v14 = vstv %s206_s4  ;;  %s356_s10 = sld [smem:[#allocation7 + $0x2]] }
  0x36   :  { %v73_v15 = vadd.f32 %v72_v8, %v68_v10  ;;  %v89_v16 = vmul.f32 %v88_v14, %v345_v1  ;;  %v93_v17 = vstv %s207_s5  ;;  %s213_s11 = sld [smem:[#allocation6 + $0x9]] }
  0x37   :  { %v94_v19 = vmul.f32 %v93_v17, %v347_v2  ;;  %s214_s12 = sld [smem:[#allocation6 + $0xc]]  ;;  %v98_v23 = vstv %s350_s6 }
  0x38   :  { %v76_v20 = vadd.f32 %v75_v12, %v73_v15  ;;  %v90_v21 = vadd.f32 %v89_v16, %v85_v13  ;;  %v104_v22 = vstv %s209_s7  ;;  %s215_s13 = sld [smem:[#allocation6 + $0xf]] }
  0x39   :  { %v105_v24 = vmul.f32 %v104_v22, %v343_v0  ;;  %v108_v25 = vstv %s210_s8  ;;  %s366_s14 = sld [smem:[#allocation7 + $0x3]] }
  0x3a   :  { %81 = vst.msk [vmem:[#allocation9] sm:$0xf] %vm359_vm0, %v76_v20  ;;  %v95_v26 = vadd.f32 %v94_v19, %v90_v21  ;;  %v109_v27 = vmul.f32 %v108_v25, %v345_v1  ;;  %v113_v28 = vstv %s211_s9  ;;  %s217_s15 = sld [smem:[#allocation6 + $0xa]] }
  0x3b   :  { %v114_v29 = vmul.f32 %v113_v28, %v347_v2  ;;  %s218_s16 = sld [smem:[#allocation6 + $0xd]]  ;;  %v118_v33 = vstv %s356_s10 }
  0x3c   :  { %v99_v30 = vadd.f32 %v98_v23, %v95_v26  ;;  %v110_v31 = vadd.f32 %v109_v27, %v105_v24  ;;  %v127_v32 = vstv %s213_s11  ;;  %s219_s17 = sld [smem:[#allocation6 + $0x10]] }
  0x3d   :  { %v128_v34 = vmul.f32 %v127_v32, %v343_v0  ;;  %v131_v35 = vstv %s214_s12  ;;  %s374_s20 = sld [smem:[#allocation7 + $0x4]] }
  0x3e   :  { %101 = vst.msk [vmem:[#allocation9 + $0x4] sm:$0xf] %vm359_vm0, %v99_v30  ;;  %v115_v36 = vadd.f32 %v114_v29, %v110_v31  ;;  %v132_v37 = vmul.f32 %v131_v35, %v345_v1  ;;  %v136_v38 = vstv %s215_s13  ;;  %s221_s21 = sld [smem:[#allocation6 + $0xb]] }
  0x3f   :  { %v137_v39 = vmul.f32 %v136_v38, %v347_v2  ;;  %s222_s22 = sld [smem:[#allocation6 + $0xe]]  ;;  %v140_v43 = vstv %s366_s14 }
  0x40   :  { %v119_v40 = vadd.f32 %v118_v33, %v115_v36  ;;  %v133_v41 = vadd.f32 %v132_v37, %v128_v34  ;;  %v146_v42 = vstv %s217_s15  ;;  %s223_s1 = sld [smem:[#allocation6 + $0x11]] }
  0x41   :  { %v147_v44 = vmul.f32 %v146_v42, %v343_v0  ;;  %v150_v45 = vstv %s218_s16  ;;  %s224_s23 = sld [smem:[#allocation7 + $0x5]] }
  0x42   :  { %121 = vst.msk [vmem:[#allocation9 + $0x8] sm:$0xf] %vm359_vm0, %v119_v40  ;;  %v138_v46 = vadd.f32 %v137_v39, %v133_v41  ;;  %v151_v47 = vmul.f32 %v150_v45, %v345_v1  ;;  %v155_v48 = vstv %s219_s17 }
  0x43   :  { %v156_v49 = vmul.f32 %v155_v48, %v347_v2  ;;  %v160_v53 = vstv %s374_s20 }
  0x44   :  { %v141_v50 = vadd.f32 %v140_v43, %v138_v46  ;;  %v152_v51 = vadd.f32 %v151_v47, %v147_v44  ;;  %v166_v52 = vstv %s221_s21 }
  0x45   :  { %v167_v54 = vmul.f32 %v166_v52, %v343_v0  ;;  %v170_v55 = vstv %s222_s22 }
  0x46   :  { %143 = vst.msk [vmem:[#allocation9 + $0xc] sm:$0xf] %vm359_vm0, %v141_v50  ;;  %v157_v56 = vadd.f32 %v156_v49, %v152_v51  ;;  %v171_v57 = vmul.f32 %v170_v55, %v345_v1  ;;  %v175_v58 = vstv %s223_s1 }
  0x47   :  { %v176_v59 = vmul.f32 %v175_v58, %v347_v2  ;;  %v180_v62 = vstv %s224_s23 }
  0x48   :  { %v161_v60 = vadd.f32 %v160_v53, %v157_v56  ;;  %v172_v61 = vadd.f32 %v171_v57, %v167_v54 }
  0x4a   :  { %163 = vst.msk [vmem:[#allocation9 + $0x10] sm:$0xf] %vm359_vm0, %v161_v60  ;;  %v177_v63 = vadd.f32 %v176_v59, %v172_v61 }
  0x4c   :  { %v181_v0 = vadd.f32 %v180_v62, %v177_v63 }
  0x4e   :  { %183 = vst.msk [vmem:[#allocation9 + $0x14] sm:$0xf] %vm359_vm0, %v181_v0 }
  0x4f   :  { %286 = shalt.err (!%p283_p5)
}
  0x50   :  { %195 = dma.vmem_to_hbm [thread:$0]  %s190_s25, 384, %s405_s3, [#allocation4], %s304_s18, %s304_s18, %s305_s19  }
  0x51   :  { %301 = dma.done.wait [#allocation4], 384  }
  0x52   :  { %302 = vsyncadd [#allocation4], 4294966912 }
  0x53   :  { %199 = vsyncpa [#allocation3], 1 }
  0x54   :  { %200 = vsyncpa [#allocation4], 1 }
  0x55   :  { %201 = vsyncpa [#allocation5], 1 }
  0x56   :  { %202 = vsyncpa [#allocation8], 1 }

</bundles_post_ra>
